<compile_context>
chip_gen: v5e
topology: v5e:2x2
jax: 0.10.0
libtpu: 0.0.40
codegen_flags: <defaults>
</compile_context>

<pallas_src>
import functools

import jax
import jax.numpy as jnp
import numpy as np
from jax import lax
from jax.experimental import pallas as pl
from jax.experimental.pallas import tpu as pltpu

LATENT_DIMS = 4  # latent heads exist in __init__ but are unused by forward


# ---------------------------------------------------------------------------
# deterministic parameter init (PyTorch-style uniform(-1/sqrt(fan_in), +))
# ---------------------------------------------------------------------------
def _uniform(key, shape, fan_in):
    bound = 1.0 / float(fan_in) ** 0.5
    return jax.random.uniform(key, shape, jnp.float32, -bound, bound)


def init_params(key):
    ks = jax.random.split(key, 6)
    return {
        "wc": _uniform(ks[0], (8, 1, 3, 3), 9),   # Conv2d(1,8,3,stride=(2,2))
        "bc": _uniform(ks[1], (8,), 9),
        "w1": _uniform(ks[2], (48, 72), 72),      # Linear(72,48)
        "b1": _uniform(ks[3], (48,), 72),
        "w2": _uniform(ks[4], (16, 48), 48),      # Linear(48,16)
        "b2": _uniform(ks[5], (16,), 48),
    }


# ---------------------------------------------------------------------------
# Pallas kernel: conv-as-matmul (im2col folded into weight) + 2-layer MLP
# ---------------------------------------------------------------------------
def encoder_kernel(x_ref, w0_ref, b0_ref, w1_ref, b1_ref, w2_ref, b2_ref, o_ref):
    # x streams from HBM as f32; cast to bf16 here (kills the XLA pre-pass
    # that previously read+wrote the whole batch through HBM once more).
    x = x_ref[...].astype(jnp.bfloat16)                          # (bn,49) bf16
    # conv1 + ReLU: one padded MXU matmul against the dense (49,72) weight
    # (bf16 operands, f32 accumulation).
    h = jnp.dot(x, w0_ref[...], preferred_element_type=jnp.float32)
    h = jnp.maximum(h + b0_ref[...], 0.0)                        # (bn,72) f32
    # Linear(72,48) + ReLU
    h = jnp.dot(h.astype(jnp.bfloat16), w1_ref[...],
                preferred_element_type=jnp.float32)
    h = jnp.maximum(h + b1_ref[...], 0.0)                        # (bn,48) f32
    # Linear(48,16) + ReLU
    h = jnp.dot(h.astype(jnp.bfloat16), w2_ref[...],
                preferred_element_type=jnp.float32)
    h = jnp.maximum(h + b2_ref[...], 0.0)                        # (bn,16) f32
    # bf16 writeback halves output bytes / vector-store count.
    # TODO(synk): lane-dense (bn//8,128) output packing skipped -- the
    # required cross-sublane repack is not a guaranteed free Mosaic lowering;
    # the (bn,16) bf16 output DMA is still contiguous.
    o_ref[...] = h.astype(o_ref.dtype)


# ---------------------------------------------------------------------------
# glue: weight re-layout (pure indexing/transposes, hoisted out of forward)
# ---------------------------------------------------------------------------
def prepare_weights(params):
    """Re-layout PyTorch-style params for the kernel.  Call once."""
    wc = params["wc"].reshape(8, 9)                  # [c, k], k = ki*3 + kj
    # Dense (49,72) weight with im2col folded in:
    #   W0[(2*pi+ki)*7 + (2*pj+kj), p*8 + c] = wc[c, ki*3+kj],  p = pi*3+pj
    rows, cols, ci, ki_ = [], [], [], []
    for p in range(9):
        pi, pj = divmod(p, 3)
        for k in range(9):
            ki, kj = divmod(k, 3)
            r = (2 * pi + ki) * 7 + (2 * pj + kj)
            for c in range(8):
                rows.append(r)
                cols.append(p * 8 + c)
                ci.append(c)
                ki_.append(k)
    w0 = jnp.zeros((49, 72), jnp.float32).at[np.array(rows), np.array(cols)].set(
        wc[np.array(ci), np.array(ki_)])
    b0 = jnp.tile(params["bc"], 9)[None, :]          # (1,72), col = p*8+c
    # permute Linear(72,48) input cols from torch flatten order (c*9+p) to (p*8+c)
    w1 = jnp.transpose(params["w1"].reshape(48, 8, 9), (2, 1, 0)).reshape(72, 48)
    b1 = params["b1"][None, :]
    w2 = params["w2"].T                              # (48,16)
    b2 = params["b2"][None, :]
    return (w0.astype(jnp.bfloat16), b0,
            w1.astype(jnp.bfloat16), b1,
            w2.astype(jnp.bfloat16), b2)


def _round_up(a, b):
    return (a + b - 1) // b * b


def _choose_block_n(n_pad):
    # Large blocks amortize per-step pipeline overhead (~0.35 us) and the
    # per-layer MXU drain; the n/8 cap keeps >= ~8 grid steps so both v7x
    # TensorCores get work plus double-buffering depth.
    bn = max(1024, min(4096, _round_up(max(n_pad // 8, 8), 8)))
    return min(bn, n_pad)


@functools.partial(jax.jit)
def cae_conv_large_encoder(x, c, prepared):
    """Forward pass.  x: (N,1,7,7) f32; c is unused (kept for signature parity)."""
    del c
    w0, b0, w1, b1, w2, b2 = prepared
    n = x.shape[0]
    x_flat = x.reshape(n, 49)                        # free metadata reshape, stays f32

    n_pad = _round_up(n, 8)                          # pad only to the sublane quantum
    if n_pad != n:
        x_flat = jnp.pad(x_flat, ((0, n_pad - n), (0, 0)))

    block_n = _choose_block_n(n_pad)
    grid = pl.cdiv(n_pad, block_n)                   # ragged last block handled by Pallas

    flops = 2 * n_pad * (49 * 72 + 72 * 48 + 48 * 16)
    bytes_accessed = (n_pad * (49 * 4 + 16 * 2)              # x f32 in, out bf16
                      + (49 * 72 + 72 * 48 + 48 * 16) * 2    # bf16 weights
                      + (72 + 48 + 16) * 4)                  # f32 biases

    const = lambda i: (0, 0)                         # weights resident across steps
    out = pl.pallas_call(
        encoder_kernel,
        out_shape=jax.ShapeDtypeStruct((n_pad, 16), jnp.bfloat16),
        grid_spec=pltpu.PrefetchScalarGridSpec(
            num_scalar_prefetch=0,
            grid=(grid,),
            in_specs=[
                pl.BlockSpec((block_n, 49), lambda i: (i, 0)),   # activation stream
                pl.BlockSpec((49, 72), const),
                pl.BlockSpec((1, 72), const),
                pl.BlockSpec((72, 48), const),
                pl.BlockSpec((1, 48), const),
                pl.BlockSpec((48, 16), const),
                pl.BlockSpec((1, 16), const),
            ],
            out_specs=pl.BlockSpec((block_n, 16), lambda i: (i, 0)),
        ),
        compiler_params=pltpu.CompilerParams(
            dimension_semantics=("parallel",),       # megacore-shard the batch grid
            vmem_limit_bytes=48 * 1024 * 1024,       # fits v7x's 64 MiB/TC with headroom
        ),
        cost_estimate=pl.CostEstimate(
            flops=flops, transcendentals=0, bytes_accessed=bytes_accessed),
    )(x_flat, w0, b0, w1, b1, w2, b2)
    return out if n_pad == n else out[:n]


# ---------------------------------------------------------------------------
# pure-JAX reference (mirrors the PyTorch forward exactly) for verification
# ---------------------------------------------------------------------------
def reference(x, params):
    conv = lax.conv_general_dilated(
        x, params["wc"], window_strides=(2, 2), padding="VALID",
        dimension_numbers=("NCHW", "OIHW", "NCHW"))
    conv = jax.nn.relu(conv + params["bc"][None, :, None, None])
    h = conv.reshape(x.shape[0], -1)                 # channel-major flatten (N,72)
    h = jax.nn.relu(h @ params["w1"].T + params["b1"])
    h = jax.nn.relu(h @ params["w2"].T + params["b2"])
    return h


if __name__ == "__main__":
    key = jax.random.PRNGKey(0)
    kp, kx, kc = jax.random.split(key, 3)
    params = init_params(kp)
    prepared = prepare_weights(params)               # hoisted: weight re-layout runs once

    # 7x7 input is implied by the module: conv(k=3,s=2) -> 3x3, 8*3*3 = 72.
    # n=2: small shape; n=1100: exercises the ragged last block + n%8 pad path;
    # n=4096: exercises the multi-step pipelined / megacore-sharded grid.
    for n in (2, 1100, 4096):
        kxn = jax.random.fold_in(kx, n)
        x = jax.random.normal(kxn, (n, 1, 7, 7), jnp.float32)
        c = jax.random.normal(kc, (n, 1), jnp.float32)   # unused, signature parity

        out = jax.block_until_ready(cae_conv_large_encoder(x, c, prepared))
        ref = reference(x, params)

        assert out.shape == (n, 16), out.shape
        err = jnp.abs(out.astype(jnp.float32) - ref)
        max_err = float(jnp.max(err))
        mean_err = float(jnp.mean(err))
        # bf16 operands/output with f32 accumulation -> relaxed tolerance vs f32 ref
        assert max_err < 1e-1 and mean_err < 2e-2, (n, max_err, mean_err)

    print("KERNEL_OK")
</pallas_src>

<mosaic_0001>
module attributes {stable_mosaic.version = 11 : i64} {
  func.func @encoder_kernel(%arg0: i32, %arg1: memref<8x49xf32, #tpu.memory_space<vmem>>, %arg2: memref<49x72xbf16, #tpu.memory_space<vmem>>, %arg3: memref<1x72xf32, #tpu.memory_space<vmem>>, %arg4: memref<72x48xbf16, #tpu.memory_space<vmem>>, %arg5: memref<1x48xf32, #tpu.memory_space<vmem>>, %arg6: memref<48x16xbf16, #tpu.memory_space<vmem>>, %arg7: memref<1x16xf32, #tpu.memory_space<vmem>>, %arg8: memref<8x16xbf16, #tpu.memory_space<vmem>>) attributes {dimension_semantics = [#tpu.dimension_semantics<parallel>], iteration_bounds = array<i64: 1>, scalar_prefetch = 0 : i64, scratch_operands = 0 : i64, tpu.core_type = #tpu.core_type<tc>, window_params = [{transform_indices = @transform_0, window_bounds = array<i64: 8, 49>}, {pipeline_mode = #tpu.pipeline_mode<synchronous>, transform_indices = @transform_1, window_bounds = array<i64: 49, 72>}, {pipeline_mode = #tpu.pipeline_mode<synchronous>, transform_indices = @transform_2, window_bounds = array<i64: 1, 72>}, {pipeline_mode = #tpu.pipeline_mode<synchronous>, transform_indices = @transform_3, window_bounds = array<i64: 72, 48>}, {pipeline_mode = #tpu.pipeline_mode<synchronous>, transform_indices = @transform_4, window_bounds = array<i64: 1, 48>}, {pipeline_mode = #tpu.pipeline_mode<synchronous>, transform_indices = @transform_5, window_bounds = array<i64: 48, 16>}, {pipeline_mode = #tpu.pipeline_mode<synchronous>, transform_indices = @transform_6, window_bounds = array<i64: 1, 16>}, {transform_indices = @transform_7, window_bounds = array<i64: 8, 16>}]} {
    %c0 = arith.constant 0 : index
    %c0_0 = arith.constant 0 : index
    %0 = vector.load %arg1[%c0, %c0_0] : memref<8x49xf32, #tpu.memory_space<vmem>>, vector<8x49xf32>
    %1 = arith.truncf %0 : vector<8x49xf32> to vector<8x49xbf16>
    %c0_1 = arith.constant 0 : index
    %c0_2 = arith.constant 0 : index
    %2 = vector.load %arg2[%c0_1, %c0_2] : memref<49x72xbf16, #tpu.memory_space<vmem>>, vector<49x72xbf16>
    %cst = arith.constant dense<0.000000e+00> : vector<8x72xf32>
    %3 = tpu.matmul %1, %2, %cst {dimension_numbers = #tpu.dot_dimension_numbers<[1], [0], [0], [1], [0, 0, 1, 1], [], []>} : vector<8x49xbf16>, vector<49x72xbf16>, vector<8x72xf32> -> vector<8x72xf32>
    %c0_3 = arith.constant 0 : index
    %c0_4 = arith.constant 0 : index
    %4 = vector.load %arg3[%c0_3, %c0_4] : memref<1x72xf32, #tpu.memory_space<vmem>>, vector<1x72xf32>
    %5 = vector.broadcast %4 : vector<1x72xf32> to vector<8x72xf32>
    %6 = arith.addf %3, %5 : vector<8x72xf32>
    %cst_5 = arith.constant 0.000000e+00 : f32
    %7 = vector.broadcast %cst_5 : f32 to vector<8x72xf32>
    %8 = arith.maximumf %6, %7 : vector<8x72xf32>
    %9 = arith.truncf %8 : vector<8x72xf32> to vector<8x72xbf16>
    %c0_6 = arith.constant 0 : index
    %c0_7 = arith.constant 0 : index
    %10 = vector.load %arg4[%c0_6, %c0_7] : memref<72x48xbf16, #tpu.memory_space<vmem>>, vector<72x48xbf16>
    %cst_8 = arith.constant dense<0.000000e+00> : vector<8x48xf32>
    %11 = tpu.matmul %9, %10, %cst_8 {dimension_numbers = #tpu.dot_dimension_numbers<[1], [0], [0], [1], [0, 0, 1, 1], [], []>} : vector<8x72xbf16>, vector<72x48xbf16>, vector<8x48xf32> -> vector<8x48xf32>
    %c0_9 = arith.constant 0 : index
    %c0_10 = arith.constant 0 : index
    %12 = vector.load %arg5[%c0_9, %c0_10] : memref<1x48xf32, #tpu.memory_space<vmem>>, vector<1x48xf32>
    %13 = vector.broadcast %12 : vector<1x48xf32> to vector<8x48xf32>
    %14 = arith.addf %11, %13 : vector<8x48xf32>
    %cst_11 = arith.constant 0.000000e+00 : f32
    %15 = vector.broadcast %cst_11 : f32 to vector<8x48xf32>
    %16 = arith.maximumf %14, %15 : vector<8x48xf32>
    %17 = arith.truncf %16 : vector<8x48xf32> to vector<8x48xbf16>
    %c0_12 = arith.constant 0 : index
    %c0_13 = arith.constant 0 : index
    %18 = vector.load %arg6[%c0_12, %c0_13] : memref<48x16xbf16, #tpu.memory_space<vmem>>, vector<48x16xbf16>
    %cst_14 = arith.constant dense<0.000000e+00> : vector<8x16xf32>
    %19 = tpu.matmul %17, %18, %cst_14 {dimension_numbers = #tpu.dot_dimension_numbers<[1], [0], [0], [1], [0, 0, 1, 1], [], []>} : vector<8x48xbf16>, vector<48x16xbf16>, vector<8x16xf32> -> vector<8x16xf32>
    %c0_15 = arith.constant 0 : index
    %c0_16 = arith.constant 0 : index
    %20 = vector.load %arg7[%c0_15, %c0_16] : memref<1x16xf32, #tpu.memory_space<vmem>>, vector<1x16xf32>
    %21 = vector.broadcast %20 : vector<1x16xf32> to vector<8x16xf32>
    %22 = arith.addf %19, %21 : vector<8x16xf32>
    %cst_17 = arith.constant 0.000000e+00 : f32
    %23 = vector.broadcast %cst_17 : f32 to vector<8x16xf32>
    %24 = arith.maximumf %22, %23 : vector<8x16xf32>
    %25 = arith.truncf %24 : vector<8x16xf32> to vector<8x16xbf16>
    %c0_18 = arith.constant 0 : index
    %c0_19 = arith.constant 0 : index
    %26 = vector.load %arg8[%c0_18, %c0_19] : memref<8x16xbf16, #tpu.memory_space<vmem>>, vector<8x16xbf16>
    tpu.vector_store %arg8[%c0_18, %c0_19], %25 {strides = array<i32>} : memref<8x16xbf16, #tpu.memory_space<vmem>>, vector<8x16xbf16>,
    return
  }
  func.func @transform_0(%arg0: i32) -> (i32, i32) {
    %c0_i32 = arith.constant 0 : i32
    %c0_i32_0 = arith.constant 0 : i32
    return %arg0, %c0_i32 : i32, i32
  }
  func.func @transform_1(%arg0: i32) -> (i32, i32) {
    %c0_i32 = arith.constant 0 : i32
    %c0_i32_0 = arith.constant 0 : i32
    %c0_i32_1 = arith.constant 0 : i32
    return %c0_i32, %c0_i32_0 : i32, i32
  }
  func.func @transform_2(%arg0: i32) -> (i32, i32) {
    %c0_i32 = arith.constant 0 : i32
    %c0_i32_0 = arith.constant 0 : i32
    %c0_i32_1 = arith.constant 0 : i32
    return %c0_i32, %c0_i32_0 : i32, i32
  }
  func.func @transform_3(%arg0: i32) -> (i32, i32) {
    %c0_i32 = arith.constant 0 : i32
    %c0_i32_0 = arith.constant 0 : i32
    %c0_i32_1 = arith.constant 0 : i32
    return %c0_i32, %c0_i32_0 : i32, i32
  }
  func.func @transform_4(%arg0: i32) -> (i32, i32) {
    %c0_i32 = arith.constant 0 : i32
    %c0_i32_0 = arith.constant 0 : i32
    %c0_i32_1 = arith.constant 0 : i32
    return %c0_i32, %c0_i32_0 : i32, i32
  }
  func.func @transform_5(%arg0: i32) -> (i32, i32) {
    %c0_i32 = arith.constant 0 : i32
    %c0_i32_0 = arith.constant 0 : i32
    %c0_i32_1 = arith.constant 0 : i32
    return %c0_i32, %c0_i32_0 : i32, i32
  }
  func.func @transform_6(%arg0: i32) -> (i32, i32) {
    %c0_i32 = arith.constant 0 : i32
    %c0_i32_0 = arith.constant 0 : i32
    %c0_i32_1 = arith.constant 0 : i32
    return %c0_i32, %c0_i32_0 : i32, i32
  }
  func.func @transform_7(%arg0: i32) -> (i32, i32) {
    %c0_i32 = arith.constant 0 : i32
    %c0_i32_0 = arith.constant 0 : i32
    return %arg0, %c0_i32 : i32, i32
  }
}

</mosaic_0001>

<bundles_post_ra>
// kernel: cae_conv_large_encoder.1
= control target key start
LH: loop header
LB: loop body
LE: loop exit
PB: predicated region body
PF: predicated region fallthrough
CT: control target
= control target key end

     0   :  { %vm65_vm0 = vcmask 1040384   ;;  %v259_v3 = vmov 0   ;;  %vm130_vm1 = vcmask 1043456   ;;  %vm61_vm2 = vcmask 400384   ;;  %s351_s1 = inlined_call_operand.vmem [shape: bf16[49,72], index: 1, kind: input, shape index: {}]   ;;  %s352_s3 = inlined_call_operand.vmem [shape: bf16[72,48], index: 3, kind: input, shape index: {}]   ;;  %s353_s2 = inlined_call_operand.vmem [shape: f32[1,72], index: 2, kind: input, shape index: {}]   ;;  %s354_s0 = inlined_call_operand.vmem [shape: f32[8,49], index: 0, kind: input, shape index: {}]   ;;  %s355_s4 = inlined_call_operand.vmem [shape: f32[1,48], index: 4, kind: input, shape index: {}]   ;;  %s356_s5 = inlined_call_operand.vmem [shape: bf16[48,16], index: 5, kind: input, shape index: {}]   ;;  %s357_s6 = inlined_call_operand.vmem [shape: f32[1,16], index: 6, kind: input, shape index: {}]   ;;  %s358_s7 = inlined_call_operand.vmem [shape: bf16[8,16], index: 7, kind: output, shape index: {}]  }
   0x1   :  { %v35_v0 = vld [vmem:[%s351_s1 + $0x18] sm:$0x1]  ;;  %v94_v2 = vld [vmem:[%s352_s3 + $0x20] sm:$0xf]  ;;  %v67_v4 = vsel %vm65_vm0, 65535, %v259_v3  ;;  %v247_v10 = vld [vmem:[%s351_s1 + $0x10] sm:$0xff] }
   0x2   :  { %v53_v1 = vunpack.c.l.b16 %v35_v0  ;;  %v116_v5 = vunpack.c.l.b16 %v94_v2  ;;  %v251_v11 = vld [vmem:[%s352_s3 + $0x18] sm:$0xff]  ;;  %v246_v12 = vld [vmem:[%s351_s1 + $0x8] sm:$0xff]  ;;  %v250_v13 = vld [vmem:[%s352_s3 + $0x10] sm:$0xff]  ;;  %vm126_vm3 = vcmask 588800   ;;  %vm177_vm4 = vcmask 392192  }
   0x3   :  { %v245_v14 = vld [vmem:[%s351_s1] sm:$0xff]  ;;  %v249_v17 = vld [vmem:[%s352_s3 + $0x8] sm:$0xff]  ;;  %v254_v19 = vld [vmem:[%s356_s5 + $0x10] sm:$0xff]  ;;  %vm196_vm5 = vcmask 125952  }
   0x4   :  { %v57_v6 = vpack.c.b16 %v53_v1, %v53_v1  ;;  %v121_v7 = vpack.c.b16 %v116_v5, %v116_v5  ;;  %v27_v15 = vld [vmem:[%s354_s0] sm:$0xff]  ;;  %186 = vmatpush.bf16.msra.mxu2 %v254_v19  ;;  %v253_v26 = vld [vmem:[%s356_s5 + $0x8] sm:$0xff] }
   0x5   :  { %v28_v16 = vpack.c.bf16 %v27_v15, %v27_v15  ;;  %v248_v18 = vld [vmem:[%s352_s3] sm:$0xff] }
   0x6   :  { %v69_v8 = vand.u32 %v67_v4, %v57_v6  ;;  %v132_v9 = vsel %vm130_vm1, %v121_v7, 0  ;;  %v256_v20 = vld [vmem:[%s353_s2] ss:$0 sm:$0xff] }
   0x7   :  { %137 = vmatpush.bf16.msra.mxu1 %v132_v9  ;;  %v252_v27 = vld [vmem:[%s356_s5] sm:$0xff] }
   0x8   :  { %75 = vmatpush.bf16.msra.mxu0 %v69_v8  ;;  %187 = vmatpush.bf16.msra.mxu2 %v253_v26  ;;  %v257_v28 = vld [vmem:[%s355_s4] ss:$0 sm:$0xff] }
   0x9   :  { %v258_v34 = vld [vmem:[%s357_s6] ss:$0 sm:$0xff] }
   0xb   :  { %138 = vmatpush.bf16.msra.mxu1 %v251_v11 }
   0xc   :  { %76 = vmatpush.bf16.msra.mxu0 %v247_v10  ;;  %188 = vmatpush.bf16.msra.mxu2 %v252_v27 }
   0xf   :  { %139 = vmatpush.bf16.msra.mxu1 %v250_v13 }
  0x10   :  { %77 = vmatpush.bf16.msra.mxu0 %v246_v12 }
  0x13   :  { %140 = vmatpush.bf16.msra.mxu1 %v249_v17 }
  0x14   :  { %78 = vmatpush.bf16.msra.mxu0 %v245_v14 }
  0x17   :  { %214 = vmatmul.msk.bf16.vlgmr.msra.gmra.mxu0 %vm61_vm2, %v28_v16  ;;  %141 = vmatpush.bf16.msra.mxu1 %v248_v18 }
  0x94   :  { %v80_v21 = vpop.f32.mrf.mxu0 }
  0x95   :  { %v81_v22 = vadd.f32 %v256_v20, %v80_v21 }
  0x97   :  { %v84_v23 = vmax.f32 %v81_v22, 0.0 }
  0x99   :  { %v85_v24 = vpack.c.bf16 %v84_v23, %v84_v23 }
  0x9b   :  { %231 = vmatmul.msk.bf16.vlgmr.msra.gmra.mxu1 %vm126_vm3, %v85_v24 }
  0x9c   :  { %v82_v25 = vpop.f32.mrf.mxu0 }
 0x118   :  { %v143_v29 = vpop.f32.mrf.mxu1 }
 0x119   :  { %v144_v30 = vadd.f32 %v257_v28, %v143_v29 }
 0x11b   :  { %v147_v31 = vmax.f32 %v144_v30, 0.0 }
 0x11d   :  { %v148_v32 = vpack.c.bf16 %v147_v31, %v147_v31 }
 0x11f   :  { %244 = vmatmul.msk.bf16.vlgmr.msra.gmra.mxu2 %vm177_vm4, %v148_v32 }
 0x120   :  { %v145_v33 = vpop.f32.mrf.mxu1 }
 0x1a2   :  { %v190_v35 = vpop.f32.mrf.mxu2 }
 0x1a3   :  { %v191_v36 = vadd.f32 %v258_v34, %v190_v35 }
 0x1a5   :  { %v194_v37 = vmax.f32 %v191_v36, 0.0 }
 0x1a7   :  { %v195_v38 = vpack.c.bf16 %v194_v37, %v194_v37 }
 0x1a9   :  { %197 = vst.msk [vmem:[%s358_s7] sm:$0xf] %vm196_vm5, %v195_v38 }
 0x1aa   :  { %v192_v39 = vpop.f32.mrf.mxu2 }

</bundles_post_ra>
